<compile_context>
chip_gen: v6e
topology: v6e:2x2x1
jax: 0.10.0
libtpu: 0.0.40
codegen_flags: <defaults>
</compile_context>

<pallas_src>
import jax
import jax.numpy as jnp
from jax.experimental import pallas as pl
from jax.experimental.pallas import tpu as pltpu

# ----- scaled-down dimensions (real BEATs: SEQ=496, HIDDEN=768, EMB=380928) ---
B = 2                    # batch
SEQ = 8                  # number of embedding frames      (stands for 496)
FRAME = 128              # raw samples per frame (stand-in patch size)
T = SEQ * FRAME          # raw audio samples per example
HIDDEN = 128             # embedding hidden size           (stands for 768)
EMB = SEQ * HIDDEN       # flattened embedding size        (stands for 496*768)
NUM_CLASSES = 10
H1, H2 = 128, 64         # classifier hidden sizes (exactly as in the module)
VMEM_LIMIT = 32 * 1024 * 1024   # safe on v5e/v6e/v7x (re-derive tiles for v7x 64 MiB phys)


# ------------------------------ small helpers ---------------------------------
def _round_up(x, m):
    return (x + m - 1) // m * m


def _pick_s_tile(seq):
    """Largest power-of-two K-chunk (<=16) dividing SEQ while leaving >= 2 grid steps.

    Real SEQ=496 -> 16 (W1 K-tile = 16*768*128*2B ~= 3 MiB per step, ~85% of HBM
    roofline per measured tiled-copy behaviour, ~9 MiB triple-buffered — fits the
    32 MiB scoped VMEM budget on all generations).  Toy SEQ=8 -> 4 (2 grid steps).
    """
    for cand in (16, 8, 4, 2, 1):
        if seq % cand == 0 and seq // cand >= 2:
            return cand
    return seq


def _pick_row_tile(rows, cap=512):
    """Largest multiple of 8 <= cap that divides `rows` (rows already a multiple of 8)."""
    tm = min(cap, rows)
    tm -= tm % 8
    while rows % tm:
        tm -= 8
    return tm


def _streamed_spec(block_shape, index_map, depth=3):
    """BlockSpec for a streamed (per-grid-step) operand; 3-deep pipelined if available."""
    if hasattr(pl, "Buffered"):
        try:
            return pl.BlockSpec(block_shape, index_map, pipeline_mode=pl.Buffered(depth))
        except TypeError:
            pass
    return pl.BlockSpec(block_shape, index_map)


# --------------------------- Pallas kernels ----------------------------------
def backbone_kernel(tok_ref, we_ref, be_ref, o_ref):
    # TODO(synk): the true BEATs backbone (conv patch-embed + 12-layer transformer,
    # loaded via torch.load) has no source here; this is a deterministic stand-in
    # per-frame projection producing embeddings of the same shape/dtype/layout as
    # model.extract_features(...)[0].
    # tok: (tm, FRAME)  we: (FRAME, HIDDEN)  be: (1, HIDDEN)  o: (tm, HIDDEN) lane-dense.
    o_ref[...] = jnp.tanh(
        jnp.dot(tok_ref[...], we_ref[...], preferred_element_type=jnp.float32)
        + be_ref[...]
    ).astype(o_ref.dtype)


def fused_classifier_kernel(tok_ref, we_ref, be_ref, w1_ref, b1_ref,
                            w2_ref, b2_ref, w3_ref, b3_ref, o_ref, acc_ref):
    """Fused stand-in backbone + 3-layer MLP head.

    Grid axis 0 iterates over SEQ in chunks of S_TILE positions (the K axis of the
    classifier's first Linear).  Per step:
      1) ONE backbone matmul over all (S_TILE*B, FRAME) token rows of the chunk
         (full-vreg bias/tanh/cast, single We weight push per step),
      2) S_TILE contiguous static-slice accumulation dots into a (B, H1) f32
         accumulator (each s uses its own W1 rows, so MXU weight-push bytes are
         the same as a single collapsed dot; pops/adds hide under the W1 DMA).
    Epilogue (last step) runs layers 2/3 on resident VMEM weights and stores a
    128-lane-padded logits block (unmasked vst).
    """
    k = pl.program_id(0)
    s_tile, bsz, frame = tok_ref.shape
    hidden = we_ref.shape[1]

    @pl.when(k == 0)
    def _init():
        acc_ref[...] = jnp.zeros_like(acc_ref)

    # ---- stand-in backbone: one matmul for the whole chunk (s-major rows) ----
    tok2d = tok_ref[...].reshape(s_tile * bsz, frame)          # leading-dim merge (layout-safe)
    emb = jnp.tanh(
        jnp.dot(tok2d, we_ref[...], preferred_element_type=jnp.float32)
        + be_ref[...]
    ).astype(w1_ref.dtype)                                     # (S_TILE*B, HIDDEN) bf16

    # ---- classifier layer-1 K-partial:  acc[b,:] += emb[s,b,:] @ W1[(k*S_TILE+s)*H ...] ----
    acc = acc_ref[...]
    for s in range(s_tile):                                    # static unroll; contiguous slices
        acc += jnp.dot(
            emb[s * bsz:(s + 1) * bsz, :],
            w1_ref[s * hidden:(s + 1) * hidden, :],
            preferred_element_type=jnp.float32,
        )
    acc_ref[...] = acc

    @pl.when(k == pl.num_programs(0) - 1)
    def _epilogue():
        h1 = jnp.maximum(acc + b1_ref[...], 0.0)
        # nn.Dropout(0.5): identity in eval mode.
        # TODO(synk): training-mode dropout RNG not implemented (module is eval()).
        h2 = jnp.maximum(
            jnp.dot(h1.astype(w2_ref.dtype), w2_ref[...],
                    preferred_element_type=jnp.float32) + b2_ref[...],
            0.0,
        )
        o_ref[...] = (
            jnp.dot(h2.astype(w3_ref.dtype), w3_ref[...],
                    preferred_element_type=jnp.float32) + b3_ref[...]
        ).astype(o_ref.dtype)


# ------------------------------ wrappers --------------------------------------
def run_backbone(tokens2d, w_embed, b_embed, *, row_cap=512):
    """(rows, FRAME) @ (FRAME, HIDDEN) + b, tanh — tiled over token rows.

    `rows` must be a multiple of 8 (wrapper pads); tile size is chosen as the
    largest multiple of 8 <= row_cap that divides rows, so real dims
    (e.g. rows = B*496) never trip a divisibility assert.
    """
    rows, frame = tokens2d.shape
    hidden = w_embed.shape[1]
    assert rows % 8 == 0
    tm = _pick_row_tile(rows, row_cap)
    cost = pl.CostEstimate(
        flops=2 * rows * frame * hidden,
        transcendentals=rows * hidden,
        bytes_accessed=int(tokens2d.size * tokens2d.dtype.itemsize
                           + w_embed.size * w_embed.dtype.itemsize
                           + rows * hidden * 4),
    )
    return pl.pallas_call(
        backbone_kernel,
        out_shape=jax.ShapeDtypeStruct((rows, hidden), jnp.float32),
        grid_spec=pltpu.PrefetchScalarGridSpec(
            num_scalar_prefetch=0,
            grid=(rows // tm,),
            in_specs=[
                pl.BlockSpec((tm, frame), lambda i: (i, 0)),
                pl.BlockSpec((frame, hidden), lambda i: (0, 0)),
                pl.BlockSpec((1, hidden), lambda i: (0, 0)),
            ],
            out_specs=pl.BlockSpec((tm, hidden), lambda i: (i, 0)),
        ),
        compiler_params=pltpu.CompilerParams(
            dimension_semantics=("parallel",),
            vmem_limit_bytes=VMEM_LIMIT,
        ),
        cost_estimate=cost,
    )(tokens2d, w_embed, b_embed)


def run_fused_classifier(tok_seq, w_embed, b_embed, w1, b1, w2, b2, w3p, b3p, *, s_tile):
    """Fused backbone + classifier, K-blocked over the sequence axis.

    tok_seq: (SEQ, B_pad, FRAME) bf16 (s-major so per-position rows are contiguous).
    """
    seq, bsz, frame = tok_seq.shape
    hidden = w_embed.shape[1]
    h1 = w1.shape[1]
    h2 = w2.shape[1]
    ncp = w3p.shape[1]
    assert seq % s_tile == 0 and bsz % 8 == 0 and ncp % 128 == 0
    nsteps = seq // s_tile

    cost = pl.CostEstimate(
        flops=(2 * bsz * seq * frame * hidden      # stand-in backbone
               + 2 * bsz * seq * hidden * h1       # classifier layer 1 (dominant)
               + 2 * bsz * h1 * h2
               + 2 * bsz * h2 * ncp),
        transcendentals=bsz * seq * hidden,        # tanh
        bytes_accessed=int(w1.size * w1.dtype.itemsize          # streamed weight (dominant)
                           + tok_seq.size * tok_seq.dtype.itemsize
                           + w2.size * w2.dtype.itemsize
                           + w3p.size * w3p.dtype.itemsize
                           + bsz * ncp * 4),
    )

    grid_spec = pltpu.PrefetchScalarGridSpec(
        num_scalar_prefetch=0,
        grid=(nsteps,),
        in_specs=[
            # streamed per step (3-deep pipelined):
            _streamed_spec((s_tile, bsz, frame), lambda k: (k, 0, 0)),     # token chunk
            # resident in VMEM across the K grid (constant index maps):
            pl.BlockSpec((frame, hidden), lambda k: (0, 0)),               # w_embed
            pl.BlockSpec((1, hidden), lambda k: (0, 0)),                   # b_embed
            # streamed per step (the big weight, 3-deep pipelined):
            _streamed_spec((s_tile * hidden, h1), lambda k: (k, 0)),       # w1 K-tile
            # resident small tail weights:
            pl.BlockSpec((1, h1), lambda k: (0, 0)),                       # b1
            pl.BlockSpec((h1, h2), lambda k: (0, 0)),                      # w2
            pl.BlockSpec((1, h2), lambda k: (0, 0)),                       # b2
            pl.BlockSpec((h2, ncp), lambda k: (0, 0)),                     # w3 (padded)
            pl.BlockSpec((1, ncp), lambda k: (0, 0)),                      # b3 (padded)
        ],
        out_specs=pl.BlockSpec((bsz, ncp), lambda k: (0, 0)),              # padded logits
        scratch_shapes=[pltpu.VMEM((bsz, h1), jnp.float32)],               # f32 accumulator
    )

    return pl.pallas_call(
        fused_classifier_kernel,
        out_shape=jax.ShapeDtypeStruct((bsz, ncp), jnp.float32),
        grid_spec=grid_spec,
        compiler_params=pltpu.CompilerParams(
            # single K-reduction axis with a carried accumulator.
            # (A v7x-only 2-TensorCore K-split would add a leading "parallel" axis
            #  with per-core partial outputs + a tiny summation epilogue.)
            dimension_semantics=("arbitrary",),
            vmem_limit_bytes=VMEM_LIMIT,
        ),
        cost_estimate=cost,
    )(tok_seq, w_embed, b_embed, w1, b1, w2, b2, w3p, b3p)


# ------------------------------ model ------------------------------------------
class BEATsModelPallas:
    """Pallas port of BEATsModel with deterministic synthetic weights (bf16)."""

    def __init__(self, num_classes: int, train_classifier: bool = False, seed: int = 42):
        self.num_classes = num_classes
        self.train_classifier = train_classifier
        self.nc_pad = _round_up(num_classes, 128)     # lane-dense logits block
        self.s_tile = _pick_s_tile(SEQ)

        ks = jax.random.split(jax.random.PRNGKey(seed), 4)
        # stand-in backbone projection (bf16 weights, f32 bias)
        self.w_embed = (jax.random.normal(ks[0], (FRAME, HIDDEN), jnp.float32)
                        / jnp.sqrt(jnp.float32(FRAME))).astype(jnp.bfloat16)
        self.b_embed = jnp.zeros((1, HIDDEN), jnp.float32)
        # classifier head (shapes from nn.Sequential in __init__), bf16 weights
        self.w1 = (jax.random.normal(ks[1], (EMB, H1), jnp.float32)
                   / jnp.sqrt(jnp.float32(EMB))).astype(jnp.bfloat16)
        self.b1 = jnp.zeros((1, H1), jnp.float32)
        self.w2 = (jax.random.normal(ks[2], (H1, H2), jnp.float32)
                   / jnp.sqrt(jnp.float32(H1))).astype(jnp.bfloat16)
        self.b2 = jnp.zeros((1, H2), jnp.float32)
        w3 = (jax.random.normal(ks[3], (H2, num_classes), jnp.float32)
              / jnp.sqrt(jnp.float32(H2)))
        self.w3p = (jnp.zeros((H2, self.nc_pad), jnp.float32)
                    .at[:, :num_classes].set(w3).astype(jnp.bfloat16))   # zero-padded lanes
        self.b3p = jnp.zeros((1, self.nc_pad), jnp.float32)

    def get_embeddings(self, input_values):
        bsz = input_values.shape[0]
        # Only the CLS (frame 0) rows are needed downstream; the stand-in backbone
        # has no cross-frame mixing, so computing just those B rows is exact here
        # (~SEQ x less MXU work and HBM writeback than computing every frame).
        # TODO(synk): the real BEATs transformer attends across frames, so it would
        # require the full (B, SEQ) token grid.
        cls_tok = input_values.reshape(bsz, SEQ, FRAME)[:, 0, :].astype(jnp.bfloat16)
        b_pad = _round_up(bsz, 8)                          # full-sublane rows
        if b_pad != bsz:
            cls_tok = jnp.pad(cls_tok, ((0, b_pad - bsz), (0, 0)))
        emb = run_backbone(cls_tok, self.w_embed, self.b_embed)   # (b_pad, HIDDEN) f32
        cls_state = emb[:bsz]                                     # (B, HIDDEN)
        return (cls_state, None)

    def forward(self, input_values, labels=None):
        if self.train_classifier:
            # NOTE: the reference code calls .reshape on the returned tuple (a bug);
            # intended semantics (EMBEDDING_SIZE = SEQ*HIDDEN) flatten the full
            # sequence embeddings before the classifier.  Backbone + layer-1 are
            # fused here so the (B, EMB) embedding never hits HBM.
            bsz = input_values.shape[0]
            b_pad = _round_up(bsz, 8)                      # full-sublane acc / logits stores
            tok = input_values.reshape(bsz, SEQ, FRAME).astype(jnp.bfloat16)
            if b_pad != bsz:
                tok = jnp.pad(tok, ((0, b_pad - bsz), (0, 0), (0, 0)))
            # s-major layout: one contiguous token DMA per K step and contiguous
            # per-position static slices inside the kernel.  Token bytes are tiny
            # compared with the streamed W1, so this one-time relayout is negligible.
            tok_seq = jnp.transpose(tok, (1, 0, 2))        # (SEQ, B_pad, FRAME)
            logits_padded = run_fused_classifier(
                tok_seq, self.w_embed, self.b_embed,
                self.w1, self.b1, self.w2, self.b2, self.w3p, self.b3p,
                s_tile=self.s_tile)                        # (B_pad, nc_pad)
            return logits_padded[:bsz, :self.num_classes]  # (B, C)
        # default path: forward returns get_embeddings' tuple (cls_state, None)
        return self.get_embeddings(input_values)


# --------------------------- pure-JAX references ---------------------------------
def _cls_reference(input_values, model):
    bsz = input_values.shape[0]
    tok = (input_values.reshape(bsz, SEQ, FRAME)[:, 0, :]
           .astype(jnp.bfloat16).astype(jnp.float32))
    return jnp.tanh(tok @ model.w_embed.astype(jnp.float32) + model.b_embed)


def _classifier_reference(input_values, model):
    bsz = input_values.shape[0]
    tok = (input_values.reshape(bsz, SEQ, FRAME)
           .astype(jnp.bfloat16).astype(jnp.float32))
    emb = jnp.tanh(tok @ model.w_embed.astype(jnp.float32) + model.b_embed)   # (B,SEQ,HID)
    xf = emb.reshape(bsz, SEQ * HIDDEN).astype(jnp.bfloat16).astype(jnp.float32)
    h1 = jnp.maximum(xf @ model.w1.astype(jnp.float32) + model.b1, 0.0)
    h2 = jnp.maximum(h1.astype(jnp.bfloat16).astype(jnp.float32)
                     @ model.w2.astype(jnp.float32) + model.b2, 0.0)
    out = (h2.astype(jnp.bfloat16).astype(jnp.float32)
           @ model.w3p.astype(jnp.float32) + model.b3p)
    return out[:, :model.num_classes]


# ------------------------------ main --------------------------------------------
if __name__ == "__main__":
    key = jax.random.PRNGKey(0)
    input_values = jax.random.normal(key, (B, T), dtype=jnp.float32)

    # default path (train_classifier=False): returns (cls_state, None)
    model = BEATsModelPallas(num_classes=NUM_CLASSES, train_classifier=False)
    cls_state, none_val = model.forward(input_values)
    cls_state = jax.block_until_ready(cls_state)
    assert cls_state.shape == (B, HIDDEN) and cls_state.dtype == jnp.float32
    assert none_val is None
    cls_ref = _cls_reference(input_values, model)
    assert bool(jnp.allclose(cls_state, cls_ref, atol=1e-2, rtol=1e-2))

    # classifier path (train_classifier=True): returns logits (B, NUM_CLASSES)
    model_cls = BEATsModelPallas(num_classes=NUM_CLASSES, train_classifier=True)
    logits = jax.block_until_ready(model_cls.forward(input_values))
    assert logits.shape == (B, NUM_CLASSES) and logits.dtype == jnp.float32
    assert bool(jnp.all(jnp.isfinite(logits)))
    logits_ref = _classifier_reference(input_values, model_cls)
    assert bool(jnp.allclose(logits, logits_ref, atol=1e-2, rtol=1e-2))

    print("KERNEL_OK")
</pallas_src>

<mosaic_0001>
module attributes {stable_mosaic.version = 11 : i64} {
  func.func @backbone_kernel(%arg0: i32, %arg1: memref<8x128xbf16, #tpu.memory_space<vmem>>, %arg2: memref<128x128xbf16, #tpu.memory_space<vmem>>, %arg3: memref<1x128xf32, #tpu.memory_space<vmem>>, %arg4: memref<8x128xf32, #tpu.memory_space<vmem>>) attributes {dimension_semantics = [#tpu.dimension_semantics<parallel>], iteration_bounds = array<i64: 1>, scalar_prefetch = 0 : i64, scratch_operands = 0 : i64, tpu.core_type = #tpu.core_type<tc>, window_params = [{transform_indices = @transform_0, window_bounds = array<i64: 8, 128>}, {pipeline_mode = #tpu.pipeline_mode<synchronous>, transform_indices = @transform_1, window_bounds = array<i64: 128, 128>}, {pipeline_mode = #tpu.pipeline_mode<synchronous>, transform_indices = @transform_2, window_bounds = array<i64: 1, 128>}, {transform_indices = @transform_3, window_bounds = array<i64: 8, 128>}]} {
    %c0 = arith.constant 0 : index
    %c0_0 = arith.constant 0 : index
    %0 = vector.load %arg1[%c0, %c0_0] : memref<8x128xbf16, #tpu.memory_space<vmem>>, vector<8x128xbf16>
    %c0_1 = arith.constant 0 : index
    %c0_2 = arith.constant 0 : index
    %1 = vector.load %arg2[%c0_1, %c0_2] : memref<128x128xbf16, #tpu.memory_space<vmem>>, vector<128x128xbf16>
    %cst = arith.constant dense<0.000000e+00> : vector<8x128xf32>
    %2 = tpu.matmul %0, %1, %cst {dimension_numbers = #tpu.dot_dimension_numbers<[1], [0], [0], [1], [0, 0, 1, 1], [], []>} : vector<8x128xbf16>, vector<128x128xbf16>, vector<8x128xf32> -> vector<8x128xf32>
    %c0_3 = arith.constant 0 : index
    %c0_4 = arith.constant 0 : index
    %3 = vector.load %arg3[%c0_3, %c0_4] : memref<1x128xf32, #tpu.memory_space<vmem>>, vector<1x128xf32>
    %4 = vector.broadcast %3 : vector<1x128xf32> to vector<8x128xf32>
    %5 = arith.addf %2, %4 : vector<8x128xf32>
    %6 = math.tanh %5 : vector<8x128xf32>
    %c0_5 = arith.constant 0 : index
    %c0_6 = arith.constant 0 : index
    %7 = vector.load %arg4[%c0_5, %c0_6] : memref<8x128xf32, #tpu.memory_space<vmem>>, vector<8x128xf32>
    tpu.vector_store %arg4[%c0_5, %c0_6], %6 {strides = array<i32>} : memref<8x128xf32, #tpu.memory_space<vmem>>, vector<8x128xf32>,
    return
  }
  func.func @transform_0(%arg0: i32) -> (i32, i32) {
    %c0_i32 = arith.constant 0 : i32
    %c0_i32_0 = arith.constant 0 : i32
    return %arg0, %c0_i32 : i32, i32
  }
  func.func @transform_1(%arg0: i32) -> (i32, i32) {
    %c0_i32 = arith.constant 0 : i32
    %c0_i32_0 = arith.constant 0 : i32
    %c0_i32_1 = arith.constant 0 : i32
    return %c0_i32, %c0_i32_0 : i32, i32
  }
  func.func @transform_2(%arg0: i32) -> (i32, i32) {
    %c0_i32 = arith.constant 0 : i32
    %c0_i32_0 = arith.constant 0 : i32
    %c0_i32_1 = arith.constant 0 : i32
    return %c0_i32, %c0_i32_0 : i32, i32
  }
  func.func @transform_3(%arg0: i32) -> (i32, i32) {
    %c0_i32 = arith.constant 0 : i32
    %c0_i32_0 = arith.constant 0 : i32
    return %arg0, %c0_i32 : i32, i32
  }
}

</mosaic_0001>

<bundles_post_ra>
// kernel: tpu_custom_call.1
= control target key start
LH: loop header
LB: loop body
LE: loop exit
PB: predicated region body
PF: predicated region fallthrough
CT: control target
= control target key end

     0   :  { %8 = vsyncpa [#allocation3], 0  ;;  %s332_s0 = inlined_call_operand.hbm [shape: bf16[8,128], index: 0, kind: input, shape index: {}]   ;;  %s333_s1 = inlined_call_operand.hbm [shape: bf16[128,128], index: 1, kind: input, shape index: {}]   ;;  %s334_s2 = inlined_call_operand.vmem [shape: f32[1,128], index: 2, kind: input, shape index: {}]   ;;  %s335_s3 = inlined_call_operand.hbm [shape: f32[8,128], index: 3, kind: output, shape index: {}]  }
   0x1   :  { %9 = vsyncpa [#allocation6], 0 }
   0x2   :  { %10 = vsyncpa [#allocation4], 0  ;;  %s293_s12 = smov [#allocation2]   ;;  %s294_s14 = smov [#allocation5]  }
   0x3   :  { %s17_s13 = sshll.u32 %s293_s12, 4  ;;  %s26_s15 = sshll.u32 %s294_s14, 4  ;;  %s18_s13 = int_to_ptr.vmem [resolvable:$true] %s17_s13  ;;  %s27_s15 = int_to_ptr.vmem [resolvable:$true] %s26_s15 }
   0x4   :  { %s235_s16 = scalar_lea.vmem %s18_s13, 64  ;;  %p240_p1 = scmp.lt.s32.totalorder %s18_s13, %s18_s13 }
   0x5   :  { %p236_p0 = scmp.ne.s32.totalorder %s18_s13, %s235_s16  ;;  %p241_p2 = scmp.lt.s32.totalorder %s235_s16, %s235_s16 }
   0x7   :  { %p242_p3 = por %p241_p2, %p240_p1 }
   0x9   :  { %p243_p4 = pnand %p242_p3, %p236_p0 }
   0xb   :  { %246 = shalt.err (!%p243_p4)
}
   0xc   :  { %20 = dma.hbm_to_vmem [thread:$0]  %s332_s0, 64, %s18_s13, [#allocation3]  }
   0xd   :  { %s255_s19 = scalar_lea.vmem %s27_s15, 1024  ;;  %p260_p6 = scmp.lt.s32.totalorder %s27_s15, %s27_s15 }
   0xe   :  { %p256_p5 = scmp.ne.s32.totalorder %s27_s15, %s255_s19  ;;  %p261_p7 = scmp.lt.s32.totalorder %s255_s19, %s255_s19 }
  0x10   :  { %p262_p8 = por %p261_p7, %p260_p6 }
  0x12   :  { %p263_p9 = pnand %p262_p8, %p256_p5 }
  0x14   :  { %266 = shalt.err (!%p263_p9)
}
  0x15   :  { %s295_s20 = smov 64   ;;  %s296_s21 = smov 4  }
  0x16   :  { %32 = dma.hbm_to_vmem [thread:$0]  %s333_s1, 1024, %s27_s15, [#allocation6], %s295_s20, %s295_s20, %s296_s21  }
  0x17   :  { %287 = dma.done.wait [#allocation3], 64  }
  0x18   :  { %288 = vsyncadd [#allocation3], 4294967232 }
  0x19   :  { %289 = dma.done.wait [#allocation6], 1024  }
  0x1a   :  { %290 = vsyncadd [#allocation6], 4294966272  ;;  %v297_v0 = vmov 0.0   ;;  %vm298_vm0 = vmmov 0   ;;  %v217_v1 = vld [vmem:[#allocation5 + $0x38] sm:$0xff]   ;;  %v218_v2 = vld [vmem:[#allocation5 + $0x30] sm:$0xff]  }
  0x1b   :  { %190 = vmatprep.subr.bf16.mxu0 %v297_v0  ;;  %206 = vmatprep.mubr.msk.bf16.mxu0 %vm298_vm0, %v297_v0  ;;  %v219_v3 = vld [vmem:[#allocation5 + $0x28] sm:$0xff]   ;;  %v220_v4 = vld [vmem:[#allocation5 + $0x20] sm:$0xff]   ;;  %v221_v5 = vld [vmem:[#allocation5 + $0x18] sm:$0xff]   ;;  %s299_s24 = smov [#allocation7]  }
  0x1c   :  { %191 = vmatpush3.bf16.msra.mxu0 %v217_v1  ;;  %v222_v6 = vld [vmem:[#allocation5 + $0x10] sm:$0xff]   ;;  %v223_v7 = vld [vmem:[#allocation5 + $0x8] sm:$0xff]   ;;  %v224_v8 = vld [vmem:[#allocation5] sm:$0xff]   ;;  %s162_s25 = sshll.u32 %s299_s24, 4  ;;  %s163_s25 = int_to_ptr.vmem [resolvable:$true] %s162_s25 }
  0x1d   :  { %192 = vmatprep.subr.bf16.mxu0 %v297_v0  ;;  %v42_v9 = vld [vmem:[#allocation2] sm:$0xf]  ;;  %s267_s26 = scalar_lea.vmem %s163_s25, 128  ;;  %p272_p11 = scmp.lt.s32.totalorder %s163_s25, %s163_s25 }
  0x1e   :  { %v172_v10 = vld [vmem:[%s334_s2] ss:$0 sm:$0xff]  ;;  %p268_p10 = scmp.ne.s32.totalorder %s163_s25, %s267_s26  ;;  %p273_p12 = scmp.lt.s32.totalorder %s267_s26, %s267_s26 }
  0x20   :  { %193 = vmatpush3.bf16.msra.mxu0 %v218_v2  ;;  %p274_p13 = por %p273_p12, %p272_p11 }
  0x21   :  { %194 = vmatprep.subr.bf16.mxu0 %v297_v0 }
  0x22   :  { %p275_p0 = pnand %p274_p13, %p268_p10 }
  0x24   :  { %195 = vmatpush3.bf16.msra.mxu0 %v219_v3 }
  0x25   :  { %196 = vmatprep.subr.bf16.mxu0 %v297_v0 }
  0x28   :  { %197 = vmatpush3.bf16.msra.mxu0 %v220_v4 }
  0x29   :  { %198 = vmatprep.subr.bf16.mxu0 %v297_v0 }
  0x2c   :  { %199 = vmatpush3.bf16.msra.mxu0 %v221_v5 }
  0x2d   :  { %200 = vmatprep.subr.bf16.mxu0 %v297_v0 }
  0x30   :  { %201 = vmatpush3.bf16.msra.mxu0 %v222_v6 }
  0x31   :  { %202 = vmatprep.subr.bf16.mxu0 %v297_v0 }
  0x34   :  { %203 = vmatpush3.bf16.msra.mxu0 %v223_v7 }
  0x35   :  { %204 = vmatprep.subr.bf16.mxu0 %v297_v0 }
  0x38   :  { %205 = vmatpush3.bf16.msra.mxu0 %v224_v8 }
  0x3b   :  { %207 = vmatmul.mubr.bf16.vlgmr.msra.gmra.mxu0 %v42_v9 }
  0xfb   :  { %v148_v11 = vpop.f32.mrf.mxu0 }
  0xfc   :  { %v149_v12 = vadd.f32 %v172_v10, %v148_v11 }
  0xfd   :  { %v208_v13 = vpop.f32.mrf.mxu0 }
  0xfe   :  { %225 = vtanh.f32 %v149_v12 }
  0xff   :  { %v151_v14 = vpop.f32.mrf.mxu0 }
 0x101   :  { %v209_v15 = vpop.f32.mrf.mxu0 }
 0x10b   :  { %v226_v16 = vpop.eup %225 }
 0x10c   :  { %155 = vst [vmem:[#allocation7] sm:$0xff] %v226_v16 }
 0x10d   :  { %278 = shalt.err (!%p275_p0)
}
 0x10e   :  { %165 = dma.vmem_to_hbm [thread:$0]  %s163_s25, 128, %s335_s3, [#allocation4]  }
 0x10f   :  { %291 = dma.done.wait [#allocation4], 128  }
 0x110   :  { %292 = vsyncadd [#allocation4], 4294967168 }
 0x111   :  { %169 = vsyncpa [#allocation3], 1 }
 0x112   :  { %170 = vsyncpa [#allocation6], 1 }
 0x113   :  { %171 = vsyncpa [#allocation4], 1 }

</bundles_post_ra>
